<compile_context>
chip_gen: v7x
topology: tpu7x:2x2x1
jax: 0.10.0
libtpu: 0.0.40
codegen_flags: <defaults>
</compile_context>

<pallas_src>
import functools

import jax
import jax.numpy as jnp
from jax.experimental import pallas as pl
from jax.experimental.pallas import tpu as pltpu


_PRED_TILE_BUDGET = 4 << 20   # ~4 MiB pred tile: past the DMA-efficiency knee, v7x-safe
_ROW_ALIGN = 32               # keeps uint8 mask blocks aligned to the int8 (32,128) tiling
_LANE_ALIGN = 128
_EDGE_RPAD = 8                # sublane-aligned halo rows for the edge kernel scratch
_EDGE_CPAD = 128              # lane-aligned halo cols for the edge kernel scratch


# ----------------------------------------------------------------------------
# helpers
# ----------------------------------------------------------------------------
def _vmem_capacity_bytes() -> int:
    try:
        return int(pltpu.get_tpu_info().vmem_capacity_bytes)
    except Exception:
        return 64 << 20   # v7x per-core VMEM: the most restrictive current chip


def _vmem_limit(need_bytes: int) -> int:
    """Explicit scoped-VMEM request with headroom; never the whole physical VMEM."""
    cap = _vmem_capacity_bytes()
    return int(min(max(need_bytes + (4 << 20), 16 << 20), (cap * 3) // 4))


def _pick_tile(dim: int, align: int, cap: int) -> int:
    """Largest tile that is a multiple of `align`, <= cap and <= floor(dim, align), chosen to
    minimize the ragged overhang of the last (cdiv) block.  Returns `dim` when dim <= align."""
    if dim <= align:
        return dim
    units = -(-dim // align)                      # ceil(dim / align)
    limit = min(dim // align, max(1, cap // align))
    nblocks = 1
    while True:
        t = -(-units // nblocks)
        if t <= limit:
            return t * align
        nblocks += 1


# ----------------------------------------------------------------------------
# Kernel 1: edge mask  (3x3 sobel-like conv -> threshold -> 7x7 stride-1 maxpool)
# ----------------------------------------------------------------------------
def _edge_mask_kernel(tgt_ref, mask_ref, scratch, *, pool_k: int):
    h = tgt_ref.shape[1]
    w = tgt_ref.shape[2]
    r = pool_k // 2
    R, C = _EDGE_RPAD, _EDGE_CPAD

    # Zero every iteration (cheap VMEM stores); safe under megacore batch sharding.
    scratch[...] = jnp.zeros_like(scratch)

    x = tgt_ref[0].astype(jnp.float32)            # (H, W), raw labels incl. ignore_index

    def put(a):
        scratch[R:R + h, C:C + w] = a

    def get(dr, dc):
        return scratch[R + dr:R + dr + h, C + dc:C + dc + w]

    # conv3x3 with kernel (9*delta - ones)/3, zero padded == 3*x - boxsum3x3/3 (separable box).
    put(x)
    rowsum = get(-1, 0) + get(0, 0) + get(1, 0)
    put(rowsum)
    box = get(0, -1) + get(0, 0) + get(0, 1)
    edge = ((3.0 * x - box * (1.0 / 3.0)) > 0.1).astype(jnp.float32)

    # 7x7 stride-1 max-pool (separable).  Edge map is in {0,1}, so the zero halo in the
    # scratch is equivalent to the reference -inf padding (window always contains its center).
    put(edge)
    m = get(-r, 0)
    for dr in range(-r + 1, r + 1):
        m = jnp.maximum(m, get(dr, 0))
    put(m)
    m = get(0, -r)
    for dc in range(-r + 1, r + 1):
        m = jnp.maximum(m, get(0, dc))

    mask_ref[0] = (m > 0.0).astype(jnp.uint8)


def edge_mask_map(target: jax.Array, pool_k: int) -> jax.Array:
    """uint8 {0,1} edge-band mask matching EdgeStrengthSceLoss.detect_edge (per batch image)."""
    n, h, w = target.shape
    r = pool_k // 2
    assert r <= _EDGE_RPAD and r <= _EDGE_CPAD, "edge_pool_kernel too large for the scratch halo"

    need = (2 * (h * w * 4 + h * w)                                   # double-buffered in/out
            + (h + 2 * _EDGE_RPAD) * (w + 2 * _EDGE_CPAD) * 4         # halo scratch
            + 6 * h * w * 4)                                          # f32 temporaries
    kern = functools.partial(_edge_mask_kernel, pool_k=int(pool_k))
    return pl.pallas_call(
        kern,
        out_shape=jax.ShapeDtypeStruct((n, h, w), jnp.uint8),
        grid_spec=pltpu.PrefetchScalarGridSpec(
            num_scalar_prefetch=0,
            grid=(n,),
            in_specs=[pl.BlockSpec((1, h, w), lambda i: (i, 0, 0))],
            out_specs=pl.BlockSpec((1, h, w), lambda i: (i, 0, 0)),
            scratch_shapes=[pltpu.VMEM((h + 2 * _EDGE_RPAD, w + 2 * _EDGE_CPAD), jnp.float32)],
        ),
        compiler_params=pltpu.CompilerParams(
            dimension_semantics=("parallel",), vmem_limit_bytes=_vmem_limit(need)),
    )(target)


# ----------------------------------------------------------------------------
# Kernel 2: fused log-softmax + NLL + smooth loss, edge-weighted, spatially tiled,
#           (8,128)-shaped per-(image, row-block) partial sums.
# ----------------------------------------------------------------------------
def _loss_kernel(*refs, ignore_index: int, num_classes: int, edge_w: float,
                 has_mask: bool, valid_h: int, valid_w: int, ragged: bool):
    if has_mask:
        pred_ref, tgt_ref, mask_ref, nll_out, sm_out = refs
    else:
        pred_ref, tgt_ref, nll_out, sm_out = refs
        mask_ref = None

    @pl.when(pl.program_id(2) == 0)
    def _():
        nll_out[...] = jnp.zeros_like(nll_out)
        sm_out[...] = jnp.zeros_like(sm_out)

    tgt = tgt_ref[0]                              # (th, tw) int32
    th, tw = tgt.shape

    # Streamed log-softmax statistics: never materialize a (C, th, tw) temporary.
    # TODO(synk): switch the unrolled class loop to lax.fori_loop for very large C.
    m = pred_ref[0, 0].astype(jnp.float32)
    for k in range(1, num_classes):
        m = jnp.maximum(m, pred_ref[0, k].astype(jnp.float32))

    exp_sum = jnp.zeros((th, tw), jnp.float32)
    picked = jnp.zeros((th, tw), jnp.float32)
    logit_sum = jnp.zeros((th, tw), jnp.float32)
    for k in range(num_classes):
        lk = pred_ref[0, k].astype(jnp.float32)
        exp_sum = exp_sum + jnp.exp(lk - m)
        picked = picked + jnp.where(tgt == k, lk, 0.0)
        logit_sum = logit_sum + lk

    lse = m + jnp.log(exp_sum)

    valid = tgt != ignore_index
    if ragged:
        # Last row/col blocks extend past the array; mask the (garbage) overhang.
        rows = pl.program_id(1) * th + jax.lax.broadcasted_iota(jnp.int32, (th, tw), 0)
        cols = pl.program_id(2) * tw + jax.lax.broadcasted_iota(jnp.int32, (th, tw), 1)
        valid = jnp.logical_and(valid, jnp.logical_and(rows < valid_h, cols < valid_w))

    nll = jnp.where(valid, lse - picked, 0.0)
    smooth = jnp.where(valid, float(num_classes) * lse - logit_sum, 0.0)

    if has_mask:
        wmap = jnp.where(mask_ref[0] != 0, jnp.float32(edge_w), jnp.float32(1.0))
        nll = nll * wmap
        smooth = smooth * wmap

    if th % 8 == 0 and tw % 128 == 0:
        # Aligned VPU fold: (th, tw) -> (8, 128) via vreg-aligned slice adds only.
        def fold(a):
            rows_acc = a[0:8, :]
            for r0 in range(8, th, 8):
                rows_acc = rows_acc + a[r0:r0 + 8, :]
            out = rows_acc[:, 0:128]
            for c0 in range(128, tw, 128):
                out = out + rows_acc[:, c0:c0 + 128]
            return out
    else:
        # Tiny-image fallback: scalar reduce into element (0, 0).
        pos0 = jnp.logical_and(
            jax.lax.broadcasted_iota(jnp.int32, (8, 128), 0) == 0,
            jax.lax.broadcasted_iota(jnp.int32, (8, 128), 1) == 0)

        def fold(a):
            return jnp.where(pos0, jnp.sum(a), jnp.float32(0.0))

    nll_out[0, 0] = nll_out[0, 0] + fold(nll)
    sm_out[0, 0] = sm_out[0, 0] + fold(smooth)


def _fused_loss_sums(logits: jax.Array, target: jax.Array, mask, *,
                     ignore_index: int, edge_weight: float):
    n, c, h, w = logits.shape
    elt = jnp.dtype(logits.dtype).itemsize
    has_mask = mask is not None

    tw = _pick_tile(w, _LANE_ALIGN, max(_LANE_ALIGN, _PRED_TILE_BUDGET // (c * _ROW_ALIGN * elt)))
    th = _pick_tile(h, _ROW_ALIGN, max(_ROW_ALIGN, _PRED_TILE_BUDGET // (c * tw * elt)))
    nh = pl.cdiv(h, th)
    nw = pl.cdiv(w, tw)
    ragged = (h % th != 0) or (w % tw != 0)
    grid = (n, nh, nw)

    in_specs = [pl.BlockSpec((1, c, th, tw), lambda b, i, j: (b, 0, i, j)),
                pl.BlockSpec((1, th, tw), lambda b, i, j: (b, i, j))]
    operands = [logits, target]
    if has_mask:
        in_specs.append(pl.BlockSpec((1, th, tw), lambda b, i, j: (b, i, j)))
        operands.append(mask)

    pred_block = c * th * tw * elt
    need = (2 * (pred_block + th * tw * 4 + (th * tw if has_mask else 0))   # double-buffered ins
            + 4 * 8 * 128 * 4                                               # two resident outputs
            + 12 * th * tw * 4)                                             # f32 temporaries

    kern = functools.partial(
        _loss_kernel, ignore_index=int(ignore_index), num_classes=int(c),
        edge_w=float(edge_weight), has_mask=has_mask,
        valid_h=int(h), valid_w=int(w), ragged=bool(ragged))

    out_shapes = (jax.ShapeDtypeStruct((n, nh, 8, 128), jnp.float32),
                  jax.ShapeDtypeStruct((n, nh, 8, 128), jnp.float32))
    out_specs = [pl.BlockSpec((1, 1, 8, 128), lambda b, i, j: (b, i, 0, 0)),
                 pl.BlockSpec((1, 1, 8, 128), lambda b, i, j: (b, i, 0, 0))]

    nll_p, sm_p = pl.pallas_call(
        kern,
        out_shape=out_shapes,
        grid_spec=pltpu.PrefetchScalarGridSpec(
            num_scalar_prefetch=0, grid=grid, in_specs=in_specs, out_specs=out_specs),
        compiler_params=pltpu.CompilerParams(
            dimension_semantics=("parallel", "parallel", "arbitrary"),
            vmem_limit_bytes=_vmem_limit(need)),
    )(*operands)
    return jnp.sum(nll_p), jnp.sum(sm_p)


# ----------------------------------------------------------------------------
# EdgeStrengthSceLoss.forward equivalent
# ----------------------------------------------------------------------------
def edge_strength_sce_loss(logits: jax.Array, target: jax.Array, *,
                           smooth_factor: float = 0.0,
                           ignore_index: int = -100,
                           edge_strength_weight: float = 5.0,
                           edge_pool_kernel: int = 7,
                           reduction: str = "mean",
                           cast_logits_to_bf16: bool = False) -> jax.Array:
    n, c, h, w = logits.shape
    assert target.shape == (n, h, w)
    target = target.astype(jnp.int32)
    if cast_logits_to_bf16 and logits.dtype == jnp.float32:
        logits = logits.astype(jnp.bfloat16)     # halves logits HBM bytes; f32 math inside

    use_edge = edge_strength_weight > 1.0
    mask = edge_mask_map(target, edge_pool_kernel) if use_edge else None

    nll_sum, smooth_sum = _fused_loss_sums(
        logits, target, mask, ignore_index=ignore_index, edge_weight=edge_strength_weight)

    if reduction == "mean":
        denom = jnp.float32(n * h * w)    # PyTorch .mean() divides by all elements (incl. ignored)
        nll_red = nll_sum / denom
        smooth_red = smooth_sum / denom
    elif reduction == "sum":
        nll_red, smooth_red = nll_sum, smooth_sum
    else:
        # TODO(synk): reduction='none' (per-pixel loss map) not implemented.
        raise NotImplementedError("only 'mean' / 'sum' reductions are implemented")

    eps_i = smooth_factor / c
    return (1.0 - smooth_factor) * nll_red + eps_i * smooth_red


# ----------------------------------------------------------------------------
# Pure-JAX/XLA reference (matches the PyTorch module) — sanity check only
# ----------------------------------------------------------------------------
def _reference(logits, target, smooth_factor, ignore_index, edge_w, pool_k, apply_edge=True):
    n, c, h, w = logits.shape
    lprobs = jax.nn.log_softmax(logits.astype(jnp.float32), axis=1)
    tgt = target[:, None, :, :]

    pad_mask = tgt == ignore_index
    tgt_safe = jnp.where(pad_mask, 0, tgt)
    nll = -jnp.take_along_axis(lprobs, tgt_safe, axis=1)
    smooth = -jnp.sum(lprobs, axis=1, keepdims=True)
    nll = jnp.where(pad_mask, 0.0, nll)
    smooth = jnp.where(pad_mask, 0.0, smooth)

    if apply_edge:
        x = tgt.astype(jnp.float32)
        sobel = (jnp.array([[-1., -1., -1.], [-1., 8., -1.], [-1., -1., -1.]],
                           jnp.float32) / 3.0).reshape(1, 1, 3, 3)
        conv = jax.lax.conv_general_dilated(
            x, sobel, (1, 1), ((1, 1), (1, 1)),
            dimension_numbers=("NCHW", "OIHW", "NCHW"),
            precision=jax.lax.Precision.HIGHEST)
        edge = (conv > 0.1).astype(jnp.float32)
        r = pool_k // 2
        pooled = jax.lax.reduce_window(edge, -jnp.inf, jax.lax.max,
                                       (1, 1, pool_k, pool_k), (1, 1, 1, 1),
                                       ((0, 0), (0, 0), (r, r), (r, r)))
        wmap = jnp.where(pooled > 0.0, jnp.float32(edge_w), jnp.float32(1.0))
        nll = nll * wmap
        smooth = smooth * wmap

    nll_m = jnp.mean(nll)
    smooth_m = jnp.mean(smooth)
    eps_i = smooth_factor / c
    return (1.0 - smooth_factor) * nll_m + eps_i * smooth_m


if __name__ == "__main__":
    key = jax.random.PRNGKey(0)
    k1, k2, k3, k4, k5 = jax.random.split(key, 5)

    IGNORE = -100
    SMOOTH = 0.1

    # Case 1: main path (edge weighting + ignore pixels), f32 logits.
    N, C, H, W = 2, 4, 16, 16
    logits = jax.random.normal(k1, (N, C, H, W), dtype=jnp.float32)
    target = jax.random.randint(k2, (N, H, W), 0, C, dtype=jnp.int32)
    target = jnp.where(jax.random.bernoulli(k3, 0.1, (N, H, W)), jnp.int32(IGNORE), target)

    loss = edge_strength_sce_loss(logits, target, smooth_factor=SMOOTH, ignore_index=IGNORE,
                                  edge_strength_weight=5.0, edge_pool_kernel=7, reduction="mean")
    loss = jax.block_until_ready(loss)
    ref = _reference(logits, target, SMOOTH, IGNORE, 5.0, 7, apply_edge=True)
    assert jnp.allclose(loss, ref, atol=1e-5, rtol=1e-4), (loss, ref)

    # Case 2: edge_strength_weight <= 1 -> no-mask kernel variant (no weight stream at all).
    loss_ne = edge_strength_sce_loss(logits, target, smooth_factor=SMOOTH, ignore_index=IGNORE,
                                     edge_strength_weight=1.0, edge_pool_kernel=7,
                                     reduction="mean")
    loss_ne = jax.block_until_ready(loss_ne)
    ref_ne = _reference(logits, target, SMOOTH, IGNORE, 1.0, 7, apply_edge=False)
    assert jnp.allclose(loss_ne, ref_ne, atol=1e-5, rtol=1e-4), (loss_ne, ref_ne)

    # Case 3: bf16 logits at the pallas_call boundary (halved HBM traffic), loose tolerance.
    loss_bf16 = edge_strength_sce_loss(logits, target, smooth_factor=SMOOTH, ignore_index=IGNORE,
                                       edge_strength_weight=5.0, edge_pool_kernel=7,
                                       reduction="mean", cast_logits_to_bf16=True)
    loss_bf16 = jax.block_until_ready(loss_bf16)
    assert jnp.allclose(loss_bf16, ref, atol=3e-2, rtol=3e-2), (loss_bf16, ref)

    # Case 4: lane-aligned width (W multiple of 128) to exercise the (8,128) VPU fold path.
    N2, C2, H2, W2 = 1, 3, 16, 256
    logits2 = jax.random.normal(k4, (N2, C2, H2, W2), dtype=jnp.float32)
    target2 = jax.random.randint(k5, (N2, H2, W2), 0, C2, dtype=jnp.int32)
    loss2 = edge_strength_sce_loss(logits2, target2, smooth_factor=0.0, ignore_index=IGNORE,
                                   edge_strength_weight=5.0, edge_pool_kernel=7, reduction="mean")
    loss2 = jax.block_until_ready(loss2)
    ref2 = _reference(logits2, target2, 0.0, IGNORE, 5.0, 7, apply_edge=True)
    assert jnp.allclose(loss2, ref2, atol=1e-5, rtol=1e-4), (loss2, ref2)

    print("KERNEL_OK")
</pallas_src>

<mosaic_0001>
module attributes {stable_mosaic.version = 11 : i64} {
  func.func @_edge_mask_kernel(%arg0: i32, %arg1: memref<1x16x16xi32, #tpu.memory_space<vmem>>, %arg2: memref<1x16x16xi8, #tpu.memory_space<vmem>>, %arg3: memref<32x272xf32, #tpu.memory_space<vmem>>) attributes {dimension_semantics = [#tpu.dimension_semantics<parallel>], iteration_bounds = array<i64: 2>, scalar_prefetch = 0 : i64, scratch_operands = 1 : i64, tpu.core_type = #tpu.core_type<tc>, window_params = [{transform_indices = @transform_0, window_bounds = array<i64: 1, 16, 16>}, {transform_indices = @transform_1, window_bounds = array<i64: 1, 16, 16>}]} {
    %cst = arith.constant 0.000000e+00 : f32
    %0 = vector.broadcast %cst : f32 to vector<32x272xf32>
    %c0 = arith.constant 0 : index
    %c0_0 = arith.constant 0 : index
    %1 = vector.load %arg3[%c0, %c0_0] : memref<32x272xf32, #tpu.memory_space<vmem>>, vector<32x272xf32>
    tpu.vector_store %arg3[%c0, %c0_0], %0 {strides = array<i32>} : memref<32x272xf32, #tpu.memory_space<vmem>>, vector<32x272xf32>,
    %c0_1 = arith.constant 0 : index
    %c0_2 = arith.constant 0 : index
    %c0_3 = arith.constant 0 : index
    %2 = vector.load %arg1[%c0_1, %c0_2, %c0_3] : memref<1x16x16xi32, #tpu.memory_space<vmem>>, vector<1x16x16xi32>
    %3 = vector.shape_cast %2 : vector<1x16x16xi32> to vector<16x16xi32>
    %4 = arith.sitofp %3 : vector<16x16xi32> to vector<16x16xf32>
    %c8 = arith.constant 8 : index
    %c128 = arith.constant 128 : index
    %5 = vector.load %arg3[%c8, %c128] : memref<32x272xf32, #tpu.memory_space<vmem>>, vector<16x16xf32>
    tpu.vector_store %arg3[%c8, %c128], %4 {strides = array<i32>} : memref<32x272xf32, #tpu.memory_space<vmem>>, vector<16x16xf32>,
    %c7 = arith.constant 7 : index
    %c128_4 = arith.constant 128 : index
    %6 = vector.load %arg3[%c7, %c128_4] : memref<32x272xf32, #tpu.memory_space<vmem>>, vector<16x16xf32>
    %c8_5 = arith.constant 8 : index
    %c128_6 = arith.constant 128 : index
    %7 = vector.load %arg3[%c8_5, %c128_6] : memref<32x272xf32, #tpu.memory_space<vmem>>, vector<16x16xf32>
    %8 = arith.addf %6, %7 : vector<16x16xf32>
    %c9 = arith.constant 9 : index
    %c128_7 = arith.constant 128 : index
    %9 = vector.load %arg3[%c9, %c128_7] : memref<32x272xf32, #tpu.memory_space<vmem>>, vector<16x16xf32>
    %10 = arith.addf %8, %9 : vector<16x16xf32>
    %c8_8 = arith.constant 8 : index
    %c128_9 = arith.constant 128 : index
    %11 = vector.load %arg3[%c8_8, %c128_9] : memref<32x272xf32, #tpu.memory_space<vmem>>, vector<16x16xf32>
    tpu.vector_store %arg3[%c8_8, %c128_9], %10 {strides = array<i32>} : memref<32x272xf32, #tpu.memory_space<vmem>>, vector<16x16xf32>,
    %c8_10 = arith.constant 8 : index
    %c127 = arith.constant 127 : index
    %12 = vector.load %arg3[%c8_10, %c127] : memref<32x272xf32, #tpu.memory_space<vmem>>, vector<16x16xf32>
    %c8_11 = arith.constant 8 : index
    %c128_12 = arith.constant 128 : index
    %13 = vector.load %arg3[%c8_11, %c128_12] : memref<32x272xf32, #tpu.memory_space<vmem>>, vector<16x16xf32>
    %14 = arith.addf %12, %13 : vector<16x16xf32>
    %c8_13 = arith.constant 8 : index
    %c129 = arith.constant 129 : index
    %15 = vector.load %arg3[%c8_13, %c129] : memref<32x272xf32, #tpu.memory_space<vmem>>, vector<16x16xf32>
    %16 = arith.addf %14, %15 : vector<16x16xf32>
    %cst_14 = arith.constant 3.000000e+00 : f32
    %17 = vector.broadcast %cst_14 : f32 to vector<16x16xf32>
    %18 = arith.mulf %17, %4 : vector<16x16xf32>
    %cst_15 = arith.constant 0.333333343 : f32
    %19 = vector.broadcast %cst_15 : f32 to vector<16x16xf32>
    %20 = arith.mulf %16, %19 : vector<16x16xf32>
    %21 = arith.subf %18, %20 : vector<16x16xf32>
    %cst_16 = arith.constant 1.000000e-01 : f32
    %22 = vector.broadcast %cst_16 : f32 to vector<16x16xf32>
    %23 = arith.cmpf ogt, %21, %22 : vector<16x16xf32>
    %24 = arith.extui %23 : vector<16x16xi1> to vector<16x16xi32>
    %25 = arith.sitofp %24 : vector<16x16xi32> to vector<16x16xf32>
    %c8_17 = arith.constant 8 : index
    %c128_18 = arith.constant 128 : index
    %26 = vector.load %arg3[%c8_17, %c128_18] : memref<32x272xf32, #tpu.memory_space<vmem>>, vector<16x16xf32>
    tpu.vector_store %arg3[%c8_17, %c128_18], %25 {strides = array<i32>} : memref<32x272xf32, #tpu.memory_space<vmem>>, vector<16x16xf32>,
    %c5 = arith.constant 5 : index
    %c128_19 = arith.constant 128 : index
    %27 = vector.load %arg3[%c5, %c128_19] : memref<32x272xf32, #tpu.memory_space<vmem>>, vector<16x16xf32>
    %c6 = arith.constant 6 : index
    %c128_20 = arith.constant 128 : index
    %28 = vector.load %arg3[%c6, %c128_20] : memref<32x272xf32, #tpu.memory_space<vmem>>, vector<16x16xf32>
    %29 = arith.maximumf %27, %28 : vector<16x16xf32>
    %c7_21 = arith.constant 7 : index
    %c128_22 = arith.constant 128 : index
    %30 = vector.load %arg3[%c7_21, %c128_22] : memref<32x272xf32, #tpu.memory_space<vmem>>, vector<16x16xf32>
    %31 = arith.maximumf %29, %30 : vector<16x16xf32>
    %c8_23 = arith.constant 8 : index
    %c128_24 = arith.constant 128 : index
    %32 = vector.load %arg3[%c8_23, %c128_24] : memref<32x272xf32, #tpu.memory_space<vmem>>, vector<16x16xf32>
    %33 = arith.maximumf %31, %32 : vector<16x16xf32>
    %c9_25 = arith.constant 9 : index
    %c128_26 = arith.constant 128 : index
    %34 = vector.load %arg3[%c9_25, %c128_26] : memref<32x272xf32, #tpu.memory_space<vmem>>, vector<16x16xf32>
    %35 = arith.maximumf %33, %34 : vector<16x16xf32>
    %c10 = arith.constant 10 : index
    %c128_27 = arith.constant 128 : index
    %36 = vector.load %arg3[%c10, %c128_27] : memref<32x272xf32, #tpu.memory_space<vmem>>, vector<16x16xf32>
    %37 = arith.maximumf %35, %36 : vector<16x16xf32>
    %c11 = arith.constant 11 : index
    %c128_28 = arith.constant 128 : index
    %38 = vector.load %arg3[%c11, %c128_28] : memref<32x272xf32, #tpu.memory_space<vmem>>, vector<16x16xf32>
    %39 = arith.maximumf %37, %38 : vector<16x16xf32>
    %c8_29 = arith.constant 8 : index
    %c128_30 = arith.constant 128 : index
    %40 = vector.load %arg3[%c8_29, %c128_30] : memref<32x272xf32, #tpu.memory_space<vmem>>, vector<16x16xf32>
    tpu.vector_store %arg3[%c8_29, %c128_30], %39 {strides = array<i32>} : memref<32x272xf32, #tpu.memory_space<vmem>>, vector<16x16xf32>,
    %c8_31 = arith.constant 8 : index
    %c125 = arith.constant 125 : index
    %41 = vector.load %arg3[%c8_31, %c125] : memref<32x272xf32, #tpu.memory_space<vmem>>, vector<16x16xf32>
    %c8_32 = arith.constant 8 : index
    %c126 = arith.constant 126 : index
    %42 = vector.load %arg3[%c8_32, %c126] : memref<32x272xf32, #tpu.memory_space<vmem>>, vector<16x16xf32>
    %43 = arith.maximumf %41, %42 : vector<16x16xf32>
    %c8_33 = arith.constant 8 : index
    %c127_34 = arith.constant 127 : index
    %44 = vector.load %arg3[%c8_33, %c127_34] : memref<32x272xf32, #tpu.memory_space<vmem>>, vector<16x16xf32>
    %45 = arith.maximumf %43, %44 : vector<16x16xf32>
    %c8_35 = arith.constant 8 : index
    %c128_36 = arith.constant 128 : index
    %46 = vector.load %arg3[%c8_35, %c128_36] : memref<32x272xf32, #tpu.memory_space<vmem>>, vector<16x16xf32>
    %47 = arith.maximumf %45, %46 : vector<16x16xf32>
    %c8_37 = arith.constant 8 : index
    %c129_38 = arith.constant 129 : index
    %48 = vector.load %arg3[%c8_37, %c129_38] : memref<32x272xf32, #tpu.memory_space<vmem>>, vector<16x16xf32>
    %49 = arith.maximumf %47, %48 : vector<16x16xf32>
    %c8_39 = arith.constant 8 : index
    %c130 = arith.constant 130 : index
    %50 = vector.load %arg3[%c8_39, %c130] : memref<32x272xf32, #tpu.memory_space<vmem>>, vector<16x16xf32>
    %51 = arith.maximumf %49, %50 : vector<16x16xf32>
    %c8_40 = arith.constant 8 : index
    %c131 = arith.constant 131 : index
    %52 = vector.load %arg3[%c8_40, %c131] : memref<32x272xf32, #tpu.memory_space<vmem>>, vector<16x16xf32>
    %53 = arith.maximumf %51, %52 : vector<16x16xf32>
    %cst_41 = arith.constant 0.000000e+00 : f32
    %54 = vector.broadcast %cst_41 : f32 to vector<16x16xf32>
    %55 = arith.cmpf ogt, %53, %54 : vector<16x16xf32>
    %56 = arith.extui %55 : vector<16x16xi1> to vector<16x16xi8>
    %c0_42 = arith.constant 0 : index
    %c0_43 = arith.constant 0 : index
    %c0_44 = arith.constant 0 : index
    %57 = vector.load %arg2[%c0_42, %c0_43, %c0_44] : memref<1x16x16xi8, #tpu.memory_space<vmem>>, vector<1x16x16xi8>
    %58 = vector.shape_cast %57 : vector<1x16x16xi8> to vector<16x16xi8>
    %59 = vector.shape_cast %56 : vector<16x16xi8> to vector<1x16x16xi8>
    tpu.vector_store %arg2[%c0_42, %c0_43, %c0_44], %59 {strides = array<i32>} : memref<1x16x16xi8, #tpu.memory_space<vmem>>, vector<1x16x16xi8>,
    return
  }
  func.func @transform_0(%arg0: i32) -> (i32, i32, i32) {
    %c0_i32 = arith.constant 0 : i32
    %c0_i32_0 = arith.constant 0 : i32
    %c0_i32_1 = arith.constant 0 : i32
    return %arg0, %c0_i32, %c0_i32_0 : i32, i32, i32
  }
  func.func @transform_1(%arg0: i32) -> (i32, i32, i32) {
    %c0_i32 = arith.constant 0 : i32
    %c0_i32_0 = arith.constant 0 : i32
    %c0_i32_1 = arith.constant 0 : i32
    return %arg0, %c0_i32, %c0_i32_0 : i32, i32, i32
  }
}

</mosaic_0001>

<bundles_post_ra>
// kernel: tpu_custom_call.1
= control target key start
LH: loop header
LB: loop body
LE: loop exit
PB: predicated region body
PF: predicated region fallthrough
CT: control target
= control target key end

     0   :  { %6 = vsyncpa [#allocation4], 0  ;;  %s1001_s0 = inlined_call_operand.hbm [shape: s32[2,16,16], index: 0, kind: input, shape index: {}]   ;;  %s1002_s1 = inlined_call_operand.hbm [shape: u8[2,16,16], index: 1, kind: output, shape index: {}]  }
   0x1   :  { %8 = vsyncpa [#allocation4 + $0x1], 0 }
   0x2   :  { %9 = vsyncpa [#allocation5], 0 }
   0x3   :  { %11 = vsyncpa [#allocation5 + $0x1], 0  ;;  %s776_s6 = smov 0   ;;  %s778_s7 = smov 0  }
   0x4   :  { %s780_s8 = smov 0   ;;  %s782_s9 = smov 0  }
   0x5 LB: > { %s797_s10 = sadd.s32 4294967295, %s748_s9   ;;  %s574_s11 = sadd.s32 4294967294, %s748_s9   ;;  %s748_s9 = sphi %s782_s9, %s1015_s9   ;;  %s744_s8 = sphi %s780_s8, %s1014_s8   ;;  %s740_s7 = sphi %s778_s7, %s1013_s7   ;;  %s736_s6 = sphi %s776_s6, %s1012_s6  }
   0x6   : > { %s801_s12 = sadd.s32 1, %s748_s9   ;;  %s24_s13 = sadd.s32 1, %s744_s8 }
   0x7   : > { %s21_s14 = ssub.s32 %s748_s9, %s801_s12  ;;  %p31_p0 = scmp.ne.s32.totalorder %s744_s8, %s740_s7 }
   0x8   : > { %p22_p1 = scmp.eq.s32.totalorder %s21_s14, 0  ;;  %p32_p2 = scmp.eq.s32.totalorder %s748_s9, 0 }
   0x9   : > { %p37_p3 = scmp.ne.s32.totalorder %s740_s7, %s736_s6  ;;  %p38_p4 = scmp.eq.s32.totalorder %s797_s10, 0 }
   0xa   : > { %s813_s15 = scalar_select %p22_p1, %s744_s8, %s24_s13  }
   0xb   : > { %p815_p5 = por %p32_p2, %p31_p0  ;;  %p819_p6 = por %p38_p4, %p37_p3 }
   0xc   : > { %p61_p7 = scmp.eq.s32.totalorder %s797_s10, 1  ;;  %p67_p8 = scmp.eq.s32.totalorder %s574_s11, 1 }
   0xd   : > { %p604_p10 = scmp.lt.s32.totalorder %s748_s9, 2  ;;  %s87_s20 = sand.u32 1, %s744_s8  }
   0xe   : > { %p826_p11 = por %p61_p7, %p31_p0  ;;  %p830_p12 = por %p67_p8, %p37_p3 }
   0xf   : > { %s590_s21 = sshll.u32 %s748_s9, 8  ;;  %s577_s22 = sshll.u32 %s87_s20, 4 }
  0x10   : > { %s1006_s18 = scalar_select %p826_p11, 1, 0 }
  0x11   : > { %s1007_s19 = scalar_select %p830_p12, 1, 0 }
  0x12   : > { %s839_s25 = scalar_lea.hbm %s1001_s0, %s590_s21  ;;  %s91_s26 = scalar_lea.vmem [#allocation3], %s577_s22 }
  0x13   : > { %s98_s27 = sshll.u32 %s91_s26, 4  ;;  %p843_p13 = pnand %p604_p10, %p815_p5  ;;  %s847_s27 = int_to_ptr.vmem [resolvable:$true] %s98_s27 }
  0x14   : > { %s849_s29 = scalar_lea.sflag [#allocation4], %s87_s20  ;;  %s652_s30 = scalar_lea.hbm %s839_s25, 256 }
  0x15   : > { %p653_p0 = scmp.ne.s32.totalorder %s839_s25, %s652_s30  ;;  %p654_p1 = pneg %p843_p13 }
  0x16   : > { %s657_s4 = scalar_lea.hbm %s1001_s0, 512  ;;  %p658_p4 = scmp.lt.u32.totalorder %s839_s25, %s1001_s0 }
  0x17   : > { %p655_p2 = pnand %p654_p1, %p653_p0  ;;  %p659_p5 = scmp.lt.u32.totalorder %s657_s4, %s652_s30 }
  0x18   : > { %p661_p8 = scmp.lt.u32.totalorder %s652_s30, %s839_s25 }
  0x19   : > { %p656_p3 = pneg %p655_p2  ;;  %p660_p7 = por %p659_p5, %p658_p4 }
  0x1b   : > { %p662_p10 = por %p661_p8, %p660_p7 }
  0x1d   : > { %p663_p9 = pnand %p662_p10, %p656_p3 }
  0x1f   : > { %666 = shalt.err (!%p663_p9)
}
  0x20   : > { %s667_s13 = scalar_lea.vmem %s847_s27, 256  ;;  %s750_s14 = smov [#allocation3]  }
  0x21   : > { %p668_p0 = scmp.ne.s32.totalorder %s847_s27, %s667_s13  ;;  %s672_s16 = sshll.u32 %s750_s14, 4  ;;  %s673_s16 = int_to_ptr.vmem [resolvable:$false] %s672_s16 }
  0x22   : > { %s674_s20 = scalar_lea.vmem %s673_s16, 512  ;;  %p675_p11 = scmp.lt.s32.totalorder %s847_s27, %s673_s16 }
  0x23   : > { %p670_p2 = pnand %p668_p0, %p654_p1  ;;  %p676_p4 = scmp.lt.s32.totalorder %s674_s20, %s667_s13 }
  0x25   : > { %p671_p12 = pneg %p670_p2  ;;  %p677_p5 = por %p676_p4, %p675_p11 }
  0x27   : > { %p678_p7 = pnand %p677_p5, %p671_p12 }
  0x29   : > { %681 = shalt.err (!%p678_p7)
}
  0x2a   : > { %s751_s21 = smov 128   ;;  %s752_s22 = smov 8  }
  0x2b   : > { %599 = dma.hbm_to_vmem [thread:$0]  (!%p843_p13), %s839_s25, 256, %s847_s27, %s849_s29, %s751_s21, %s751_s21, %s752_s22  }
  0x2c   : > { %p580_p9 = scmp.ge.s32.totalorder %s748_s9, 1  ;;  %p106_p1 = scmp.lt.s32.totalorder %s748_s9, 3 }
  0x2e   : > { %p107_p3 = pnand %p580_p9, %p106_p1 }
  0x2f   : > { %s880_s23 = sand.u32 (!%p107_p3), 1, %s740_s7  }
  0x30   : > { %110 = sbr.rel (%p107_p3) target bundleno = 658 (0x292), region = 24  ;;  %s581_s24 = sshll.u32 (!%p107_p3), %s880_s23, 4 }
  0x31   : > { %s113_s26 = scalar_lea.sflag (!%p107_p3), [#allocation4], %s880_s23  ;;  %s116_s30 = scalar_lea.vmem (!%p107_p3), [#allocation3], %s581_s24 }
  0x37   : > { %727 = dma.done.wait (%p819_p6), %s113_s26, 256  }
  0x38   : > { %729 = vsyncadd (%p819_p6), %s113_s26, 4294967040  ;;  %vm139_vm0 = vcmask 130048   ;;  %v753_v0 = vmov 0.0   ;;  %v892_v1 = vld [vmem:[%s116_s30] sm:$0xff]  ;;  %v894_v2 = vld [vmem:[%s116_s30 + $0x8] sm:$0xff]  ;;  %vm162_vm1 = vcmask 1046528  }
  0x39   : > { %138 = vst [vmem:[#allocation2 + $0x8] sm:$0xff] %v753_v0  ;;  %142 = vst [vmem:[#allocation2 + $0x20] sm:$0xff] %v753_v0  ;;  %v152_v3 = vcvt.s32.f32 %v892_v1  ;;  %v153_v4 = vcvt.s32.f32 %v894_v2  ;;  %vm176_vm2 = vcmask 1045504   ;;  %vm191_vm3 = vcmask 1040384   ;;  %s754_s17 = smov 127   ;;  %s755_s25 = smov 126  }
  0x3a   : > { %145 = vst [vmem:[#allocation2 + $0x38] sm:$0xff] %v753_v0  ;;  %148 = vst [vmem:[#allocation2 + $0x50] sm:$0xff] %v753_v0  ;;  %s756_s27 = smov 1   ;;  %vm245_vm4 = vcmask 7168   ;;  %vm296_vm7 = vcmask 1044480   ;;  %vm310_vm8 = vcmask 1043456  }
  0x3b   : > { %154 = vst.msk [vmem:[#allocation2 + $0x20] sm:$0xff] %vm139_vm0, %v152_v3  ;;  %155 = vst.msk [vmem:[#allocation2 + $0x38] sm:$0xff] %vm139_vm0, %v153_v4  ;;  %v227_v46 = vmul.f32 3.0, %v152_v3  ;;  %v228_v51 = vmul.f32 3.0, %v153_v4  ;;  %vm326_vm9 = vcmask 1042432   ;;  %vm342_vm10 = vcmask 1041408  }
  0x3c   : > { %s757_s28 = smov 125   ;;  %s758_s29 = smov 124   ;;  %vm382_vm11 = vcmask 1039360   ;;  %vm401_vm12 = vcmask 1031168  }
  0x3d   : > { %s759_s2 = smov 123   ;;  %s760_s3 = smov 122  }
  0x3e   : > { %s762_s4 = smov 3   ;;  %s582_s5 = sshll.u32 %s880_s23, 2 }
  0x3f   : > { %s591_s11 = sshll.u32 %s797_s10, 6  ;;  %s134_s13 = scalar_lea.vmem [#allocation6], %s582_s5 }
  0x40   : > { %v156_v6 = vld [vmem:[#allocation2 + $0x8] sm:$0x80]  ;;  %s501_s14 = sshll.u32 %s134_s13, 4  ;;  %s955_s21 = scalar_lea.hbm %s1002_s1, %s591_s11  ;;  %s957_s14 = int_to_ptr.vmem [resolvable:$true] %s501_s14 }
  0x41   : > { %v173_v5 = vld [vmem:[#allocation2 + $0x50] sm:$0x1]  ;;  %v263_v57 = vld [vmem:[#allocation2 + $0x8] sm:$0xc0]  ;;  %s488_s10 = scalar_lea.sflag [#allocation5], %s880_s23  ;;  %s682_s22 = scalar_lea.vmem %s957_s14, 64 }
  0x42   : > { %v157_v7 = vld [vmem:[#allocation2 + $0x20] sm:$0xff]  ;;  %v159_v8 = vld [vmem:[#allocation2 + $0x38] sm:$0xff]  ;;  %v180_v10 = vrot.slane %v173_v5, 2  ;;  %v279_v59 = vld [vmem:[#allocation2 + $0x8] sm:$0x80]  ;;  %v268_v60 = vrot.slane %v263_v57, 1  ;;  %p683_p6 = scmp.ne.s32.totalorder %s957_s14, %s682_s22 }
  0x43   : > { %v172_v9 = vld [vmem:[#allocation2 + $0x20] sm:$0xfe]  ;;  %v163_v11 = vrot.slane %v157_v7, 1  ;;  %v164_v12 = vrot.slane %v159_v8, 1  ;;  %v178_v14 = vrot.slane %v159_v8, 2  ;;  %v283_v63 = vrot.slane %v279_v59, 2 }
  0x44   : > { %v177_v13 = vrot.slane %v172_v9, 2  ;;  %v158_v15 = vld [vmem:[#allocation2 + $0x38] sm:$0x7f]  ;;  %v260_v62 = vld [vmem:[#allocation2 + $0x8] sm:$0xe0]  ;;  %p1009_p11 = scmp.ne.s32.totalorder %s1006_s18, 0 }
  0x45   : > { %v165_v16 = vsel %vm162_vm1, %v163_v11, %v164_v12  ;;  %v169_v17 = vadd.f32 %v163_v11, %v156_v6  ;;  %v171_v19 = vadd.f32 %v164_v12, %v158_v15  ;;  %v181_v21 = vsel %vm176_vm2, %v178_v14, %v180_v10  ;;  %v307_v4 = vld [vmem:[#allocation2 + $0x50] sm:$0x1]  ;;  %s763_s24 = smov [#allocation6]  }
  0x46   : > { %v179_v18 = vsel %vm176_vm2, %v177_v13, %v178_v14  ;;  %v170_v20 = vadd.f32 %v165_v16, %v157_v7  ;;  %v314_v14 = vrot.slane %v307_v4, 4  ;;  %v323_v15 = vld [vmem:[#allocation2 + $0x50] sm:$0x3]  ;;  %p684_p12 = pnand %p683_p6, %p1009_p11  ;;  %s686_s26 = sshll.u32 %s763_s24, 4  ;;  %s687_s26 = int_to_ptr.vmem [resolvable:$false] %s686_s26 }
  0x47   : > { %v185_v22 = vadd.f32 %v177_v13, %v169_v17  ;;  %v187_v23 = vadd.f32 %v181_v21, %v171_v19  ;;  %s688_s30 = scalar_lea.vmem %s687_s26, 128  ;;  %p689_p8 = scmp.lt.s32.totalorder %s957_s14, %s687_s26 }
  0x48   : > { %v186_v24 = vadd.f32 %v179_v18, %v170_v20  ;;  %p685_p13 = pneg %p684_p12  ;;  %p690_p10 = scmp.lt.s32.totalorder %s688_s30, %s682_s22 }
  0x49   : > { %v192_v25 = vrot.slane %v185_v22, 7  ;;  %v195_v26 = vrot.slane %v187_v23, 7  ;;  %v339_v23 = vld [vmem:[#allocation2 + $0x50] sm:$0x7] }
  0x4a   : > { %v193_v27 = vrot.slane %v186_v24, 7  ;;  %p691_p0 = por %p690_p10, %p689_p8 }
  0x4c   : > { %v194_v28 = vsel %vm191_vm3, %v192_v25, %v193_v27  ;;  %v196_v29 = vsel %vm191_vm3, %v193_v27, %v195_v26  ;;  %v330_v26 = vrot.slane %v323_v15, 5  ;;  %p692_p2 = pnand %p691_p0, %p685_p13 }
  0x4d   : > { %199 = vst.msk [vmem:[#allocation2 + $0x20] sm:$0xff] %vm139_vm0, %v194_v28  ;;  %200 = vst.msk [vmem:[#allocation2 + $0x38] sm:$0xff] %vm139_vm0, %v196_v29 }
  0x54   : > { %v202_v30 = vld [vmem:[#allocation2 + $0x20] sm:$0xff]  ;;  %v204_v31 = vld [vmem:[#allocation2 + $0x38] sm:$0xff] }
  0x55   : > { %207 = vrot.lane.b32.xlu0 %v202_v30, %s754_s17  ;;  %217 = vrot.lane.b32.xlu1 %v202_v30, %s755_s25 }
  0x59   : > { %209 = vrot.lane.b32.xlu0 %v204_v31, %s754_s17  ;;  %219 = vrot.lane.b32.xlu1 %v204_v31, %s755_s25 }
  0xc7   : > { %v208_v32 = vpop.permute.xlu0 %207  ;;  %v218_v33 = vpop.permute.xlu1 %217 }
  0xc8   : > { %v214_v34 = vadd.f32 %v208_v32, %v202_v30  ;;  %v223_v35 = vadd.f32 %v218_v33, %v208_v32 }
  0xca   : > { %v224_v36 = vadd.f32 %v218_v33, %v214_v34  ;;  %v229_v39 = vmul.f32 0.33333334, %v223_v35  ;;  %v346_v34 = vrot.slane %v339_v23, 6 }
  0xcb   : > { %v210_v37 = vpop.permute.xlu0 %209  ;;  %v220_v38 = vpop.permute.xlu1 %219 }
  0xcc   : > { %v230_v40 = vmul.f32 0.33333334, %v224_v36  ;;  %v216_v41 = vadd.f32 %v210_v37, %v204_v31  ;;  %v225_v42 = vadd.f32 %v220_v38, %v210_v37  ;;  %237 = vrot.lane.b32.xlu0 %v229_v39, %s756_s27 }
  0xce   : > { %v226_v43 = vadd.f32 %v220_v38, %v216_v41  ;;  %239 = vrot.lane.b32.xlu1 %v230_v40, %s756_s27  ;;  %v231_v44 = vmul.f32 0.33333334, %v225_v42 }
  0xd0   : > { %v232_v45 = vmul.f32 0.33333334, %v226_v43  ;;  %241 = vrot.lane.b32.xlu0 %v231_v44, %s756_s27 }
  0xd2   : > { %243 = vrot.lane.b32.xlu1 %v232_v45, %s756_s27 }
  0xd4   : > { %374 = vrot.lane.b32.xlu0 %v753_v0, %s754_s17 }
  0xd8   : > { %378 = vrot.lane.b32.xlu0 %v753_v0, %s754_s17 }
  0xdc   : > { %393 = vrot.lane.b32.xlu0 %v753_v0, %s755_s25 }
  0xe0   : > { %397 = vrot.lane.b32.xlu0 %v753_v0, %s755_s25 }
 0x13e   : > { %v238_v48 = vpop.permute.xlu0 %237 }
 0x140   : > { %v240_v47 = vpop.permute.xlu1 %239 }
 0x141   : > { %v246_v49 = vsel %vm245_vm4, %v238_v48, %v240_v47 }
 0x142   : > { %v250_v50 = vsub.f32 %v227_v46, %v246_v49  ;;  %v242_v53 = vpop.permute.xlu0 %241 }
 0x144   : > { %vm252_vm5 = vcmp.gt.f32.partialorder %v250_v50, 0.1  ;;  %v244_v52 = vpop.permute.xlu1 %243 }
 0x145   : > { %v583_v54 = vsel %vm252_vm5, 1.0, %v753_v0  ;;  %v247_v55 = vsel %vm245_vm4, %v242_v53, %v244_v52  ;;  %vm474_vm5 = vcmask 23552  }
 0x146   : > { %258 = vst.msk [vmem:[#allocation2 + $0x20] sm:$0xff] %vm139_vm0, %v583_v54  ;;  %v251_v56 = vsub.f32 %v228_v51, %v247_v55 }
 0x148   : > { %vm253_vm6 = vcmp.gt.f32.partialorder %v251_v56, 0.1 }
 0x149   : > { %v584_v58 = vsel %vm253_vm6, 1.0, %v753_v0 }
 0x14a   : > { %259 = vst.msk [vmem:[#allocation2 + $0x38] sm:$0xff] %vm139_vm0, %v584_v58 }
 0x14d   : > { %v261_v61 = vld [vmem:[#allocation2 + $0x20] sm:$0xff] }
 0x14e   : > { %v269_v1 = vrot.slane %v261_v61, 1  ;;  %v284_v2 = vrot.slane %v261_v61, 2  ;;  %v306_v9 = vld [vmem:[#allocation2 + $0x20] sm:$0xfe]  ;;  %v297_v13 = vrot.slane %v261_v61, 3 }
 0x14f   : > { %v322_v17 = vld [vmem:[#allocation2 + $0x20] sm:$0xfc]  ;;  %v311_v22 = vrot.slane %v306_v9, 4 }
 0x150   : > { %v270_v3 = vsel %vm162_vm1, %v268_v60, %v269_v1  ;;  %v285_v8 = vsel %vm176_vm2, %v283_v63, %v284_v2  ;;  %v327_v30 = vrot.slane %v322_v17, 5  ;;  %v338_v33 = vld [vmem:[#allocation2 + $0x20] sm:$0xf8] }
 0x151   : > { %v276_v5 = vmax.f32 %v260_v62, %v270_v3  ;;  %v264_v6 = vld [vmem:[#allocation2 + $0x38] sm:$0x3f]  ;;  %v343_v43 = vrot.slane %v338_v33, 6 }
 0x152   : > { %v280_v7 = vld [vmem:[#allocation2 + $0x38] sm:$0x7f]  ;;  %v271_v10 = vrot.slane %v264_v6, 1 }
 0x153   : > { %v286_v0 = vrot.slane %v280_v7, 2  ;;  %v294_v11 = vld [vmem:[#allocation2 + $0x38] sm:$0xff]  ;;  %v291_v12 = vmax.f32 %v276_v5, %v285_v8 }
 0x154   : > { %v262_v16 = vld [vmem:[#allocation2 + $0x38] sm:$0x1f]  ;;  %v272_v18 = vsel %vm162_vm1, %v269_v1, %v271_v10  ;;  %v298_v20 = vrot.slane %v294_v11, 3  ;;  %v312_v25 = vrot.slane %v294_v11, 4  ;;  %v328_v32 = vrot.slane %v294_v11, 5 }
 0x155   : > { %v278_v19 = vmax.f32 %v262_v16, %v271_v10  ;;  %v303_v21 = vmax.f32 %v291_v12, %v297_v13  ;;  %v277_v24 = vmax.f32 %v261_v61, %v272_v18  ;;  %v287_v27 = vsel %vm176_vm2, %v284_v2, %v286_v0  ;;  %v375_v61 = vpop.permute.xlu0 %374 }
 0x156   : > { %v299_v35 = vsel %vm296_vm7, %v297_v13, %v298_v20  ;;  %v315_v39 = vsel %vm310_vm8, %v312_v25, %v314_v14  ;;  %v344_v40 = vrot.slane %v294_v11, 6  ;;  %v313_v41 = vsel %vm310_vm8, %v311_v22, %v312_v25 }
 0x157   : > { %v293_v28 = vmax.f32 %v278_v19, %v286_v0  ;;  %v319_v29 = vmax.f32 %v303_v21, %v311_v22  ;;  %v292_v31 = vmax.f32 %v277_v24, %v287_v27  ;;  %v331_v45 = vsel %vm326_vm9, %v328_v32, %v330_v26 }
 0x158   : > { %v329_v46 = vsel %vm326_vm9, %v327_v30, %v328_v32  ;;  %v347_v50 = vsel %vm342_vm10, %v344_v40, %v346_v34  ;;  %v345_v51 = vsel %vm342_vm10, %v343_v43, %v344_v40  ;;  %vm484_vm7 = vcmask 123904  }
 0x159   : > { %v305_v36 = vmax.f32 %v293_v28, %v298_v20  ;;  %v335_v37 = vmax.f32 %v319_v29, %v327_v30  ;;  %v304_v38 = vmax.f32 %v292_v31, %v299_v35  ;;  %v379_v62 = vpop.permute.xlu0 %378 }
 0x15b   : > { %v321_v42 = vmax.f32 %v305_v36, %v315_v39  ;;  %v320_v44 = vmax.f32 %v304_v38, %v313_v41  ;;  %v351_v48 = vmax.f32 %v335_v37, %v343_v43  ;;  %v761_v41 = vmov 0  }
 0x15d   : > { %v337_v47 = vmax.f32 %v321_v42, %v331_v45  ;;  %v336_v49 = vmax.f32 %v320_v44, %v329_v46  ;;  %v357_v55 = vrot.slane %v351_v48, 5  ;;  %v394_v63 = vpop.permute.xlu0 %393 }
 0x15f   : > { %v353_v52 = vmax.f32 %v337_v47, %v347_v50  ;;  %v352_v53 = vmax.f32 %v336_v49, %v345_v51 }
 0x161   : > { %v360_v54 = vrot.slane %v353_v52, 5  ;;  %v358_v56 = vrot.slane %v352_v53, 5  ;;  %v398_v1 = vpop.permute.xlu0 %397 }
 0x163   : > { %v359_v57 = vsel %vm326_vm9, %v357_v55, %v358_v56  ;;  %v361_v58 = vsel %vm326_vm9, %v358_v56, %v360_v54 }
 0x164   : > { %365 = vst.msk [vmem:[#allocation2 + $0x38] sm:$0xff] %vm139_vm0, %v361_v58  ;;  %364 = vst.msk [vmem:[#allocation2 + $0x20] sm:$0xff] %vm139_vm0, %v359_v57 }
 0x16b   : > { %v367_v59 = vld [vmem:[#allocation2 + $0x20] sm:$0xff]  ;;  %v369_v60 = vld [vmem:[#allocation2 + $0x38] sm:$0xff] }
 0x16c   : > { %412 = vrot.lane.b32.xlu0 %v367_v59, %s757_s28  ;;  %376 = vrot.lane.b32.xlu1 %v367_v59, %s754_s17 }
 0x170   : > { %422 = vrot.lane.b32.xlu0 %v367_v59, %s758_s29  ;;  %380 = vrot.lane.b32.xlu1 %v369_v60, %s754_s17 }
 0x174   : > { %432 = vrot.lane.b32.xlu0 %v367_v59, %s759_s2  ;;  %395 = vrot.lane.b32.xlu1 %v367_v59, %s755_s25 }
 0x178   : > { %442 = vrot.lane.b32.xlu0 %v367_v59, %s760_s3  ;;  %399 = vrot.lane.b32.xlu1 %v369_v60, %s755_s25 }
 0x17c   : > { %414 = vrot.lane.b32.xlu1 %v369_v60, %s757_s28 }
 0x180   : > { %424 = vrot.lane.b32.xlu1 %v369_v60, %s758_s29 }
 0x184   : > { %434 = vrot.lane.b32.xlu1 %v369_v60, %s759_s2 }
 0x188   : > { %444 = vrot.lane.b32.xlu1 %v369_v60, %s760_s3 }
 0x1de   : > { %v377_v2 = vpop.permute.xlu1 %376  ;;  %v413_v3 = vpop.permute.xlu0 %412 }
 0x1df   : > { %v383_v5 = vsel %vm382_vm11, %v375_v61, %v377_v2  ;;  %v390_v7 = vmax.f32 %v367_v59, %v377_v2 }
 0x1e0   : > { %v389_v8 = vmax.f32 %v383_v5, 0.0 }
 0x1e2   : > { %v381_v4 = vpop.permute.xlu1 %380  ;;  %v423_v6 = vpop.permute.xlu0 %422 }
 0x1e3   : > { %v384_v17 = vsel %vm382_vm11, %v379_v62, %v381_v4  ;;  %v392_v25 = vmax.f32 %v369_v60, %v381_v4 }
 0x1e4   : > { %v391_v23 = vmax.f32 %v384_v17, 0.0 }
 0x1e6   : > { %v396_v9 = vpop.permute.xlu1 %395  ;;  %v433_v14 = vpop.permute.xlu0 %432 }
 0x1e7   : > { %v402_v10 = vsel %vm401_vm12, %v394_v63, %v396_v9  ;;  %v409_v0 = vmax.f32 %v390_v7, %v396_v9 }
 0x1e8   : > { %v408_v11 = vmax.f32 %v389_v8, %v402_v10 }
 0x1e9   : > { %v419_v12 = vmax.f32 %v409_v0, %v413_v3 }
 0x1ea   : > { %v418_v13 = vmax.f32 %v408_v11, %v413_v3  ;;  %v400_v15 = vpop.permute.xlu1 %399  ;;  %v443_v24 = vpop.permute.xlu0 %442 }
 0x1eb   : > { %v429_v16 = vmax.f32 %v419_v12, %v423_v6  ;;  %v403_v21 = vsel %vm401_vm12, %v398_v1, %v400_v15  ;;  %v411_v30 = vmax.f32 %v392_v25, %v400_v15 }
 0x1ec   : > { %v428_v18 = vmax.f32 %v418_v13, %v423_v6  ;;  %v410_v26 = vmax.f32 %v391_v23, %v403_v21 }
 0x1ed   : > { %v439_v19 = vmax.f32 %v429_v16, %v433_v14 }
 0x1ee   : > { %v438_v20 = vmax.f32 %v428_v18, %v433_v14  ;;  %v415_v22 = vpop.permute.xlu1 %414 }
 0x1ef   : > { %v449_v28 = vmax.f32 %v439_v19, %v443_v24  ;;  %v420_v31 = vmax.f32 %v410_v26, %v415_v22  ;;  %v421_v32 = vmax.f32 %v411_v30, %v415_v22 }
 0x1f0   : > { %v448_v27 = vmax.f32 %v438_v20, %v443_v24 }
 0x1f1   : > { %vm453_vm14 = vcmp.gt.f32.partialorder %v449_v28, 0.0 }
 0x1f2   : > { %v425_v29 = vpop.permute.xlu1 %424  ;;  %vm452_vm13 = vcmp.gt.f32.partialorder %v448_v27, 0.0 }
 0x1f3   : > { %v430_v34 = vmax.f32 %v420_v31, %v425_v29  ;;  %v431_v35 = vmax.f32 %v421_v32, %v425_v29  ;;  %vm456_vm15 = vmpackc.low %vm453_vm14, %vm452_vm13 }
 0x1f4   : > { %vm457_vm0 = vmpackc.even %vm456_vm15, %vm456_vm15 }
 0x1f5   : > { %v460_v42 = vsel %vm457_vm0, 16843009, %v761_v41 }
 0x1f6   : > { %v435_v33 = vpop.permute.xlu1 %434  ;;  %v462_v44 = vunpack.c.0.s8 %v460_v42  ;;  %v463_v45 = vunpack.c.1.s8 %v460_v42 }
 0x1f7   : > { %v440_v36 = vmax.f32 %v430_v34, %v435_v33  ;;  %v441_v37 = vmax.f32 %v431_v35, %v435_v33 }
 0x1fa   : > { %v445_v38 = vpop.permute.xlu1 %444 }
 0x1fb   : > { %v450_v39 = vmax.f32 %v440_v36, %v445_v38  ;;  %v451_v40 = vmax.f32 %v441_v37, %v445_v38 }
 0x1fd   : > { %vm454_vm1 = vcmp.gt.f32.partialorder %v450_v39, 0.0  ;;  %vm455_vm2 = vcmp.gt.f32.partialorder %v451_v40, 0.0 }
 0x1fe   : > { %vm458_vm3 = vmpackc.low %vm455_vm2, %vm454_vm1 }
 0x1ff   : > { %vm459_vm4 = vmpackc.even %vm458_vm3, %vm458_vm3 }
 0x200   : > { %v461_v43 = vsel %vm459_vm4, 16843009, %v761_v41 }
 0x201   : > { %v464_v46 = vunpack.c.0.s8 %v461_v43  ;;  %v465_v47 = vunpack.c.1.s8 %v461_v43 }
 0x203   : > { %v468_v48 = vpack.c.b16 %v465_v47, %v463_v45  ;;  %v466_v49 = vpack.c.b16 %v464_v46, %v462_v44 }
 0x205   : > { %v469_v50 = vpack.c.b8 %v468_v48, %v468_v48  ;;  %v467_v51 = vpack.c.b8 %v466_v49, %v466_v49 }
 0x207   : > { %472 = vrot.lane.b32.xlu1 %v469_v50, %s762_s4  ;;  %470 = vrot.lane.b32.xlu0 %v467_v51, %s762_s4 }
 0x279   : > { %v473_v52 = vpop.permute.xlu1 %472  ;;  %v471_v53 = vpop.permute.xlu0 %470 }
 0x27a   : > { %v475_v54 = vsel %vm474_vm5, %v471_v53, %v473_v52 }
 0x27b   : > { %vm476_vm6 = vnez %v475_v54 }
 0x27c   : > { %v477_v55 = vsel %vm476_vm6, 16843009, %v761_v41 }
 0x27d   : > { %v478_v56 = vunpack.c.0.s8 %v477_v55  ;;  %v479_v57 = vunpack.c.1.s8 %v477_v55 }
 0x27f   : > { %v480_v58 = vpack.c.b16 %v478_v56, %v478_v56  ;;  %v482_v59 = vpack.c.b16 %v479_v57, %v479_v57 }
 0x281   : > { %v481_v60 = vpack.c.b8 %v480_v58, %v480_v58  ;;  %v483_v61 = vpack.c.b8 %v482_v59, %v482_v59 }
 0x283   : > { %485 = vst.msk [vmem:[%s134_s13] sm:$0x3] %vm484_vm7, %v481_v60  ;;  %486 = vst.msk [vmem:[%s134_s13 + $0x2] sm:$0x3] %vm484_vm7, %v483_v61 }
 0x284   : > { %695 = shalt.err (!%p692_p2)
}
 0x285   : > { %s696_s17 = scalar_lea.hbm %s955_s21, 64  ;;  %s700_s28 = scalar_lea.hbm %s1002_s1, 128 }
 0x286   : > { %p697_p4 = scmp.ne.s32.totalorder %s955_s21, %s696_s17  ;;  %p701_p9 = scmp.lt.u32.totalorder %s955_s21, %s1002_s1 }
 0x287   : > { %p702_p1 = scmp.lt.u32.totalorder %s700_s28, %s696_s17  ;;  %p704_p6 = scmp.lt.u32.totalorder %s696_s17, %s955_s21 }
 0x288   : > { %p698_p5 = pnand %p697_p4, %p1009_p11 }
 0x289   : > { %p703_p3 = por %p702_p1, %p701_p9 }
 0x28a   : > { %p699_p7 = pneg %p698_p5 }
 0x28b   : > { %p705_p12 = por %p704_p6, %p703_p3 }
 0x28d   : > { %p706_p13 = pnand %p705_p12, %p699_p7 }
 0x28f   : > { %709 = shalt.err (!%p706_p13)
}
 0x290   : > { %s764_s3 = smov 32   ;;  %s765_s4 = smov 2  }
 0x291   : > { %594 = dma.vmem_to_hbm [thread:$0]  (%p1009_p11), %s957_s14, 64, %s955_s21, %s488_s10, %s764_s3, %s764_s3, %s765_s4  }
 0x292 PF: > { %s516_s5 = sand.u32 1, %s736_s6   ;;  %p1010_p8 = scmp.ne.s32.totalorder %s1007_s19, 0 }
 0x293   : > { %p1011_p10 = scmp.ge.s32.totalorder %s748_s9, 2  ;;  %s517_s11 = scalar_lea.sflag [#allocation5], %s516_s5 }
 0x295   : > { %p601_p0 = pnand %p1011_p10, %p1010_p8 }
 0x297   : > { %731 = dma.done.wait (!%p601_p0), %s517_s11, 64  }
 0x298   : > { %733 = vsyncadd (!%p601_p0), %s517_s11, 4294967232  ;;  %p14_p2 = scmp.ge.s32.totalorder %s801_s12, 4   ;;  %s1012_s6 = smov %s740_s7 }
 0x299   : > { %s1013_s7 = smov %s744_s8  ;;  %s1014_s8 = smov %s813_s15 }
 0x29a   : > { %s1015_s9 = smov %s801_s12  ;;  %16 = sbr.rel (!%p14_p2) target bundleno = 5 (0x5), region = 69 }
 0x2a1   :  { %522 = vsyncpa [#allocation4], 1 }
 0x2a2   :  { %524 = vsyncpa [#allocation4 + $0x1], 1 }
 0x2a3   :  { %525 = vsyncpa [#allocation5], 1 }
 0x2a4   :  { %527 = vsyncpa [#allocation5 + $0x1], 1 }

</bundles_post_ra>
